<compile_context>
chip_gen: v7x
topology: tpu7x:2x2x1
jax: 0.10.0
libtpu: 0.0.40
codegen_flags: <defaults>
</compile_context>

<pallas_src>
import jax
import jax.numpy as jnp
from jax.experimental import pallas as pl
from jax.experimental.pallas import tpu as pltpu

EPS = 1e-5

# Conservative, v7x-safe sizing (v7x: 64 MiB physical VMEM per TensorCore).
_VMEM_BUFFER_BUDGET = 16 * 1024 * 1024   # aggregate live pipeline/working tiles
_PER_BUFFER_CAP_BYTES = 2 * 1024 * 1024  # any single pipeline buffer
_DEFAULT_VMEM_LIMIT = 48 * 1024 * 1024
_MAX_TILE_ROWS = 1024
_MIN_GRID_STEPS = 8                      # keep both v7x TCs busy on large inputs


def _round_up(v, m):
    return ((v + m - 1) // m) * m


def _vmem_limit_bytes():
    # Derive the scoped limit from the actual chip when possible instead of
    # hard-coding; never ask for more than 3/4 of physical VMEM.
    try:
        cap = pltpu.get_tpu_info().vmem_capacity_bytes
    except Exception:
        cap = 64 * 1024 * 1024  # assume smallest generation (v7x per-TC)
    return min(_DEFAULT_VMEM_LIMIT, (cap * 3) // 4)


def _sublane_mult(itemsize):
    # sublane multiple depends on dtype packing (8 f32, 16 bf16, 32 int8/fp8)
    if itemsize >= 4:
        return 8
    if itemsize == 2:
        return 16
    return 32


def _pick_tile_rows(rows, D, in_itemsize, out_itemsize, has_residual):
    mult = max(_sublane_mult(in_itemsize), _sublane_mult(out_itemsize))

    # Live VMEM per row of tile:
    #   2x double-buffered input tiles (I/O dtype), optionally 2x residual tiles,
    #   2x double-buffered output tiles (out dtype),
    #   + ~3 f32 working tiles (upcast x, centered x, normalized y).
    n_in_bufs = 2 * (2 if has_residual else 1)
    bytes_per_row = D * (n_in_bufs * in_itemsize + 2 * out_itemsize + 3 * 4)
    tr = max(mult, _VMEM_BUFFER_BUDGET // max(bytes_per_row, 1))

    # Per-buffer cap (~2 MiB): measured mem-bound scaling shows 256-512 row
    # tiles already sit at ~85% of HBM roofline; bigger buys <1% and eats VMEM.
    per_buf_rows = _PER_BUFFER_CAP_BYTES // max(D * max(in_itemsize, out_itemsize), 1)
    tr = min(tr, max(mult, per_buf_rows), _MAX_TILE_ROWS)
    tr = max(mult, (tr // mult) * mult)

    rows_padded = _round_up(rows, mult)
    # For large inputs, force >= _MIN_GRID_STEPS grid steps so the parallel
    # grid axis can be sharded across TensorCores (v7x has 2 per chip).
    if rows_padded > mult * _MIN_GRID_STEPS:
        tr = min(tr, _round_up(pl.cdiv(rows_padded, _MIN_GRID_STEPS), mult))
    return min(tr, rows_padded)


def _make_ln_kernel(has_bias, has_residual):
    def kernel(*refs):
        i = 0
        x_ref = refs[i]; i += 1
        r_ref = None
        if has_residual:
            r_ref = refs[i]; i += 1
        w_ref = refs[i]; i += 1
        b_ref = None
        if has_bias:
            b_ref = refs[i]; i += 1
        o_ref = refs[i]

        x = x_ref[...].astype(jnp.float32)
        if has_residual:
            x = x + r_ref[...].astype(jnp.float32)

        # Two-pass stats over the vreg/VMEM-resident tile (torch-matching
        # numerics; no E[x^2]-E[x]^2 cancellation). Reduction is over lanes (D).
        mean = jnp.mean(x, axis=-1, keepdims=True)
        xc = x - mean
        var = jnp.mean(xc * xc, axis=-1, keepdims=True)
        y = xc * jax.lax.rsqrt(var + EPS)

        y = y * w_ref[...].astype(jnp.float32)
        if has_bias:
            y = y + b_ref[...].astype(jnp.float32)
        o_ref[...] = y.astype(o_ref.dtype)

    return kernel


def layer_norm(x, weight, bias=None, residual=None, out_dtype=None):
    """LayerNorm over the last dim of x (any leading dims), matching
    F.layer_norm(x, (D,), weight, bias, eps=1e-5).

    Fusion hooks (both optional, default off => exact module semantics):
      residual:  same shape as x, added to x *before* normalization.
      out_dtype: dtype of the output (e.g. bf16 for the consuming matmul).
    """
    orig_shape = x.shape
    D = orig_shape[-1]
    rows = 1
    for s in orig_shape[:-1]:
        rows *= s
    out_dtype = x.dtype if out_dtype is None else jnp.dtype(out_dtype)

    x2 = x.reshape(rows, D)
    w2 = weight.reshape(1, D)
    has_bias = bias is not None
    has_residual = residual is not None

    tr = _pick_tile_rows(
        rows, D,
        jnp.dtype(x.dtype).itemsize,
        jnp.dtype(out_dtype).itemsize,
        has_residual,
    )
    grid = (pl.cdiv(rows, tr),)
    # Padded rows in the last partial block only affect dropped output rows
    # (the reduction is over D, not rows), so cdiv is safe.
    # TODO(synk): for D < 128 stores are partially masked; a packed layout
    # (128 // D rows per lane-row + segmented reduction) or pl.Buffered(3)
    # pipelining would recover the wasted lane/store bandwidth. Production
    # hidden sizes (D % 128 == 0) are already lane-dense with this layout.
    # TODO(synk): on v7x with bf16 I/O the VALU slot (not HBM) binds first;
    # offloading the row-sum reductions to the idle MXU (dot with a ones
    # matrix) is a further ~20-30% there. Kept off for v5e/v6e simplicity.

    row_spec = pl.BlockSpec((tr, D), lambda i: (i, 0))
    # Constant index_map keeps weight/bias resident in VMEM across grid steps.
    param_spec = pl.BlockSpec((1, D), lambda i: (0, 0))

    operands = [x2]
    in_specs = [row_spec]
    if has_residual:
        operands.append(residual.reshape(rows, D))
        in_specs.append(row_spec)
    operands.append(w2)
    in_specs.append(param_spec)
    if has_bias:
        operands.append(bias.reshape(1, D))
        in_specs.append(param_spec)

    compiler_params = pltpu.CompilerParams(
        # Shards the row grid across TensorCores on v7x; no-op on v5e/v6e.
        dimension_semantics=("parallel",),
        vmem_limit_bytes=_vmem_limit_bytes(),
    )

    out = pl.pallas_call(
        _make_ln_kernel(has_bias, has_residual),
        out_shape=jax.ShapeDtypeStruct((rows, D), out_dtype),
        grid=grid,
        in_specs=in_specs,
        out_specs=row_spec,
        compiler_params=compiler_params,
    )(*operands)

    return out.reshape(orig_shape[:-1] + (D,)).reshape(orig_shape) if out_dtype == x.dtype \
        else out.reshape(orig_shape[:-1] + (D,))


if __name__ == "__main__":
    key = jax.random.PRNGKey(0)
    B, T, D = 2, 8, 32
    kx, kr = jax.random.split(key)
    x = jax.random.normal(kx, (B, T, D), dtype=jnp.float32)

    # deterministic parameter init matching nn.Parameter(torch.ones/zeros(ndim))
    weight = jnp.ones((D,), dtype=jnp.float32)
    bias = jnp.zeros((D,), dtype=jnp.float32)

    def ref_ln(v, w, b=None):
        m = jnp.mean(v, axis=-1, keepdims=True)
        var = jnp.mean((v - m) ** 2, axis=-1, keepdims=True)
        y = (v - m) * jax.lax.rsqrt(var + EPS) * w
        return y + b if b is not None else y

    # bias=True path
    y = jax.block_until_ready(layer_norm(x, weight, bias))
    assert jnp.allclose(y, ref_ln(x, weight, bias), atol=1e-5, rtol=1e-5), \
        "mismatch vs reference (bias)"

    # bias=False path of the module
    y_nb = jax.block_until_ready(layer_norm(x, weight, None))
    assert jnp.allclose(y_nb, ref_ln(x, weight), atol=1e-5, rtol=1e-5), \
        "mismatch vs reference (no bias)"

    # fused residual-add hook (optional; default-off path already checked above)
    res = jax.random.normal(kr, (B, T, D), dtype=jnp.float32)
    y_res = jax.block_until_ready(layer_norm(x, weight, bias, residual=res))
    assert jnp.allclose(y_res, ref_ln(x + res, weight, bias), atol=1e-5, rtol=1e-5), \
        "mismatch vs reference (residual fusion)"

    print("KERNEL_OK")
</pallas_src>

<mosaic_0001>
module attributes {stable_mosaic.version = 11 : i64} {
  func.func @kernel(%arg0: i32, %arg1: memref<16x32xf32, #tpu.memory_space<vmem>>, %arg2: memref<1x32xf32, #tpu.memory_space<vmem>>, %arg3: memref<1x32xf32, #tpu.memory_space<vmem>>, %arg4: memref<16x32xf32, #tpu.memory_space<vmem>>) attributes {dimension_semantics = [#tpu.dimension_semantics<parallel>], iteration_bounds = array<i64: 1>, scalar_prefetch = 0 : i64, scratch_operands = 0 : i64, tpu.core_type = #tpu.core_type<tc>, window_params = [{transform_indices = @transform_0, window_bounds = array<i64: 16, 32>}, {pipeline_mode = #tpu.pipeline_mode<synchronous>, transform_indices = @transform_1, window_bounds = array<i64: 1, 32>}, {pipeline_mode = #tpu.pipeline_mode<synchronous>, transform_indices = @transform_2, window_bounds = array<i64: 1, 32>}, {transform_indices = @transform_3, window_bounds = array<i64: 16, 32>}]} {
    %c0 = arith.constant 0 : index
    %c0_0 = arith.constant 0 : index
    %0 = vector.load %arg1[%c0, %c0_0] : memref<16x32xf32, #tpu.memory_space<vmem>>, vector<16x32xf32>
    %cst = arith.constant dense<0.000000e+00> : vector<16xf32>
    %1 = vector.multi_reduction <add>, %0, %cst [1] : vector<16x32xf32> to vector<16xf32>
    %2 = vector.shape_cast %1 : vector<16xf32> to vector<16x1xf32>
    %cst_1 = arith.constant 3.200000e+01 : f32
    %3 = vector.broadcast %cst_1 : f32 to vector<16x1xf32>
    %4 = arith.divf %2, %3 : vector<16x1xf32>
    %5 = vector.broadcast %4 : vector<16x1xf32> to vector<16x32xf32>
    %6 = arith.subf %0, %5 : vector<16x32xf32>
    %7 = arith.mulf %6, %6 : vector<16x32xf32>
    %cst_2 = arith.constant dense<0.000000e+00> : vector<16xf32>
    %8 = vector.multi_reduction <add>, %7, %cst_2 [1] : vector<16x32xf32> to vector<16xf32>
    %9 = vector.shape_cast %8 : vector<16xf32> to vector<16x1xf32>
    %cst_3 = arith.constant 3.200000e+01 : f32
    %10 = vector.broadcast %cst_3 : f32 to vector<16x1xf32>
    %11 = arith.divf %9, %10 : vector<16x1xf32>
    %cst_4 = arith.constant 9.99999974E-6 : f32
    %12 = vector.broadcast %cst_4 : f32 to vector<16x1xf32>
    %13 = arith.addf %11, %12 : vector<16x1xf32>
    %14 = math.rsqrt %13 : vector<16x1xf32>
    %15 = vector.broadcast %14 : vector<16x1xf32> to vector<16x32xf32>
    %16 = arith.mulf %6, %15 : vector<16x32xf32>
    %c0_5 = arith.constant 0 : index
    %c0_6 = arith.constant 0 : index
    %17 = vector.load %arg2[%c0_5, %c0_6] : memref<1x32xf32, #tpu.memory_space<vmem>>, vector<1x32xf32>
    %18 = vector.broadcast %17 : vector<1x32xf32> to vector<16x32xf32>
    %19 = arith.mulf %16, %18 : vector<16x32xf32>
    %c0_7 = arith.constant 0 : index
    %c0_8 = arith.constant 0 : index
    %20 = vector.load %arg3[%c0_7, %c0_8] : memref<1x32xf32, #tpu.memory_space<vmem>>, vector<1x32xf32>
    %21 = vector.broadcast %20 : vector<1x32xf32> to vector<16x32xf32>
    %22 = arith.addf %19, %21 : vector<16x32xf32>
    %c0_9 = arith.constant 0 : index
    %c0_10 = arith.constant 0 : index
    %23 = vector.load %arg4[%c0_9, %c0_10] : memref<16x32xf32, #tpu.memory_space<vmem>>, vector<16x32xf32>
    tpu.vector_store %arg4[%c0_9, %c0_10], %22 {strides = array<i32>} : memref<16x32xf32, #tpu.memory_space<vmem>>, vector<16x32xf32>,
    return
  }
  func.func @transform_0(%arg0: i32) -> (i32, i32) {
    %c0_i32 = arith.constant 0 : i32
    %c0_i32_0 = arith.constant 0 : i32
    return %arg0, %c0_i32 : i32, i32
  }
  func.func @transform_1(%arg0: i32) -> (i32, i32) {
    %c0_i32 = arith.constant 0 : i32
    %c0_i32_0 = arith.constant 0 : i32
    %c0_i32_1 = arith.constant 0 : i32
    return %c0_i32, %c0_i32_0 : i32, i32
  }
  func.func @transform_2(%arg0: i32) -> (i32, i32) {
    %c0_i32 = arith.constant 0 : i32
    %c0_i32_0 = arith.constant 0 : i32
    %c0_i32_1 = arith.constant 0 : i32
    return %c0_i32, %c0_i32_0 : i32, i32
  }
  func.func @transform_3(%arg0: i32) -> (i32, i32) {
    %c0_i32 = arith.constant 0 : i32
    %c0_i32_0 = arith.constant 0 : i32
    return %arg0, %c0_i32 : i32, i32
  }
}

</mosaic_0001>

<bundles_post_ra>
// kernel: tpu_custom_call.1
= control target key start
LH: loop header
LB: loop body
LE: loop exit
PB: predicated region body
PF: predicated region fallthrough
CT: control target
= control target key end

     0   :  { %8 = vsyncpa [#allocation3], 0  ;;  %s220_s0 = inlined_call_operand.hbm [shape: f32[16,32], index: 0, kind: input, shape index: {}]   ;;  %s221_s1 = inlined_call_operand.vmem [shape: f32[1,32], index: 1, kind: input, shape index: {}]   ;;  %s222_s2 = inlined_call_operand.vmem [shape: f32[1,32], index: 2, kind: input, shape index: {}]   ;;  %s223_s3 = inlined_call_operand.hbm [shape: f32[16,32], index: 3, kind: output, shape index: {}]  }
   0x1   :  { %9 = vsyncpa [#allocation4], 0  ;;  %s154_s12 = smov [#allocation2]   ;;  %s106_s16 = scalar_lea.hbm %s220_s0, 256 }
   0x2   :  { %s15_s13 = sshll.u32 %s154_s12, 4  ;;  %p107_p0 = scmp.ne.s32.totalorder %s220_s0, %s106_s16  ;;  %s16_s13 = int_to_ptr.vmem [resolvable:$true] %s15_s13 }
   0x3   :  { %p110_p1 = scmp.lt.u32.totalorder %s106_s16, %s220_s0 }
   0x5   :  { %p112_p2 = pnand %p110_p1, %p107_p0 }
   0x7   :  { %115 = shalt.err (!%p112_p2)
}
   0x8   :  { %s116_s21 = scalar_lea.vmem %s16_s13, 256  ;;  %p121_p4 = scmp.lt.s32.totalorder %s16_s13, %s16_s13 }
   0x9   :  { %p117_p3 = scmp.ne.s32.totalorder %s16_s13, %s116_s21  ;;  %p122_p5 = scmp.lt.s32.totalorder %s116_s21, %s116_s21 }
   0xb   :  { %p123_p6 = por %p122_p5, %p121_p4 }
   0xd   :  { %p124_p7 = pnand %p123_p6, %p117_p3 }
   0xf   :  { %127 = shalt.err (!%p124_p7)
}
  0x10   :  { %s155_s22 = smov 128   ;;  %s156_s23 = smov 8  }
  0x11   :  { %21 = dma.hbm_to_vmem [thread:$0]  %s220_s0, 256, %s16_s13, [#allocation3], %s155_s22, %s155_s22, %s156_s23  }
  0x12   :  { %150 = dma.done.wait [#allocation3], 256  }
  0x13   :  { %151 = vsyncadd [#allocation3], 4294967040  ;;  %vm31_vm0 = vcmask 261120   ;;  %v29_v0 = vld [vmem:[#allocation2] sm:$0xff]  ;;  %v30_v1 = vld [vmem:[#allocation2 + $0x8] sm:$0xff]  ;;  %s157_s29 = smov [#allocation5]  }
  0x14   :  { %v32_v2 = vsel %vm31_vm0, %v29_v0, 0.0  ;;  %v35_v3 = vsel %vm31_vm0, %v30_v1, 0.0  ;;  %v96_v21 = vld [vmem:[%s221_s1] ss:$0 sm:$0xff]  ;;  %s84_s30 = sshll.u32 %s157_s29, 4  ;;  %s85_s30 = int_to_ptr.vmem [resolvable:$true] %s84_s30 }
  0x15   :  { %33 = vadd.xlane.f32.xlu0 %v32_v2  ;;  %v97_v23 = vld [vmem:[%s222_s2] ss:$0 sm:$0xff]  ;;  %s128_s4 = scalar_lea.vmem %s85_s30, 256  ;;  %p133_p9 = scmp.lt.s32.totalorder %s85_s30, %s85_s30 }
  0x16   :  { %p129_p8 = scmp.ne.s32.totalorder %s85_s30, %s128_s4  ;;  %p134_p10 = scmp.lt.s32.totalorder %s128_s4, %s128_s4 }
  0x18   :  { %p135_p11 = por %p134_p10, %p133_p9 }
  0x19   :  { %36 = vadd.xlane.f32.xlu0 %v35_v3 }
  0x1a   :  { %p136_p12 = pnand %p135_p11, %p129_p8 }
  0xa2   :  { %v34_v4 = vpop.xlane.xlu0 %33 }
  0xa3   :  { %v39_v5 = vmul.f32 0.03125, %v34_v4 }
  0xa5   :  { %v41_v6 = vsub.f32 %v29_v0, %v39_v5 }
  0xa6   :  { %v37_v7 = vpop.xlane.xlu0 %36 }
  0xa7   :  { %v40_v8 = vmul.f32 0.03125, %v37_v7  ;;  %v43_v9 = vmul.f32 %v41_v6, %v41_v6 }
  0xa9   :  { %v42_v10 = vsub.f32 %v30_v1, %v40_v8  ;;  %v45_v11 = vsel %vm31_vm0, %v43_v9, 0.0 }
  0xaa   :  { %46 = vadd.xlane.f32.xlu1 %v45_v11 }
  0xab   :  { %v44_v12 = vmul.f32 %v42_v10, %v42_v10 }
  0xad   :  { %v48_v13 = vsel %vm31_vm0, %v44_v12, 0.0 }
  0xae   :  { %49 = vadd.xlane.f32.xlu1 %v48_v13 }
 0x137   :  { %v47_v14 = vpop.xlane.xlu1 %46 }
 0x138   :  { %v51_v15 = vmul.f32 0.03125, %v47_v14 }
 0x13a   :  { %v53_v16 = vadd.f32 1e-05, %v51_v15 }
 0x13b   :  { %v50_v17 = vpop.xlane.xlu1 %49 }
 0x13c   :  { %102 = vrsqrt.f32 %v53_v16  ;;  %v52_v18 = vmul.f32 0.03125, %v50_v17 }
 0x13e   :  { %v54_v19 = vadd.f32 1e-05, %v52_v18 }
 0x140   :  { %104 = vrsqrt.f32 %v54_v19 }
 0x146   :  { %v103_v20 = vpop.eup %102 }
 0x147   :  { %v57_v22 = vmul.f32 %v103_v20, %v41_v6 }
 0x149   :  { %v66_v24 = vmul.f32 %v96_v21, %v57_v22 }
 0x14a   :  { %v105_v25 = vpop.eup %104 }
 0x14b   :  { %v58_v26 = vmul.f32 %v105_v25, %v42_v10  ;;  %v75_v27 = vadd.f32 %v97_v23, %v66_v24 }
 0x14d   :  { %v67_v28 = vmul.f32 %v96_v21, %v58_v26  ;;  %77 = vst.msk [vmem:[#allocation5] sm:$0xff] %vm31_vm0, %v75_v27 }
 0x14f   :  { %v76_v29 = vadd.f32 %v97_v23, %v67_v28 }
 0x151   :  { %78 = vst.msk [vmem:[#allocation5 + $0x8] sm:$0xff] %vm31_vm0, %v76_v29 }
 0x152   :  { %139 = shalt.err (!%p136_p12)
}
 0x153   :  { %s140_s5 = scalar_lea.hbm %s223_s3, 256 }
 0x154   :  { %p141_p13 = scmp.ne.s32.totalorder %s223_s3, %s140_s5  ;;  %p144_p0 = scmp.lt.u32.totalorder %s140_s5, %s223_s3 }
 0x156   :  { %p146_p1 = pnand %p144_p0, %p141_p13 }
 0x158   :  { %149 = shalt.err (!%p146_p1)
}
 0x159   :  { %90 = dma.vmem_to_hbm [thread:$0]  %s85_s30, 256, %s223_s3, [#allocation4], %s155_s22, %s155_s22, %s156_s23  }
 0x15a   :  { %152 = dma.done.wait [#allocation4], 256  }
 0x15b   :  { %153 = vsyncadd [#allocation4], 4294967040 }
 0x15c   :  { %94 = vsyncpa [#allocation3], 1 }
 0x15d   :  { %95 = vsyncpa [#allocation4], 1 }

</bundles_post_ra>
